<compile_context>
chip_gen: v5e
topology: v5e:2x2
jax: 0.10.0
libtpu: 0.0.40
codegen_flags: <defaults>
</compile_context>

<pallas_src>
import functools

import jax
import jax.numpy as jnp
from jax.experimental import pallas as pl
from jax.experimental.pallas import tpu as pltpu


def head_kernel(x_ref, w_ref, mask_ref, o_ref,
                qkv_ref, m_ref, l_ref, acc_ref, *, bb, t, tk, hp, mxu_dtype):
    # x_ref: (bb*t, C) bf16    w_ref: (C, 3*hp) bf16   mask_ref: (t, tk) f32
    # o_ref: (bb, t, hp)       qkv_ref: (bb, t, 3*hp) bf16 scratch
    # m/l:   (bb, t, 1) f32    acc:    (bb, t, hp) f32
    j = pl.program_id(1)

    @pl.when(j == 0)
    def _():
        # Fused QKV projection once per batch block: M = bb*t rows fills the MXU.
        # q is pre-scaled by 1/sqrt(C) via the weights (folded in the wrapper).
        qkv = jnp.dot(x_ref[...], w_ref[...], preferred_element_type=jnp.float32)
        qkv_ref[...] = qkv.reshape(bb, t, 3 * hp).astype(mxu_dtype)
        m_ref[...] = jnp.full(m_ref.shape, -jnp.inf, dtype=jnp.float32)
        l_ref[...] = jnp.zeros(l_ref.shape, dtype=jnp.float32)
        acc_ref[...] = jnp.zeros(acc_ref.shape, dtype=jnp.float32)

    q = qkv_ref[:, :, :hp]                              # (bb, t, hp) bf16, pre-scaled
    start = pl.multiple_of(j * tk, tk)
    kv = qkv_ref[:, pl.ds(start, tk), :]                # (bb, tk, 3*hp) bf16
    k = kv[:, :, hp:2 * hp]
    v = kv[:, :, 2 * hp:]

    # Scores: contract the head axis directly (no materialized k.T); zero-padded
    # head columns contribute nothing to the contraction.
    s = jnp.einsum('bqh,bkh->bqk', q, k,
                   preferred_element_type=jnp.float32)  # (bb, t, tk) f32
    # Precomputed additive causal bias: single VPU add per score element.
    s = s + mask_ref[...][None, :, :]

    # Online softmax (f32). Column 0 is always unmasked at j == 0, so m is
    # finite after the first KV step and no -inf - -inf NaN can occur.
    m_prev = m_ref[...]
    m_new = jnp.maximum(m_prev, jnp.max(s, axis=-1, keepdims=True))
    alpha = jnp.exp(m_prev - m_new)
    p = jnp.exp(s - m_new)                              # unnormalized probabilities
    l_ref[...] = alpha * l_ref[...] + jnp.sum(p, axis=-1, keepdims=True)
    acc_ref[...] = alpha * acc_ref[...] + jnp.einsum(
        'bqk,bkh->bqh', p.astype(mxu_dtype), v,
        preferred_element_type=jnp.float32)
    m_ref[...] = m_new

    @pl.when(j == pl.num_programs(1) - 1)
    def _():
        # Normalization after the PV matmul, in f32; approx reciprocal runs on
        # the otherwise-idle EUP slot. Lane-dense (hp multiple of 128) store.
        inv_l = pl.reciprocal(l_ref[...], approx=True)
        o_ref[...] = (acc_ref[...] * inv_l).astype(o_ref.dtype)


def _vmem_capacity_bytes():
    """Generation-aware VMEM capacity (64 MiB on v7x, 128 MiB on v5e/v6e)."""
    try:
        info = pltpu.get_tpu_info()
        cap = getattr(info, "vmem_capacity_bytes", None)
        if cap:
            return int(cap)
    except Exception:
        pass
    return 64 * 1024 * 1024  # conservative fallback (v7x-sized)


def _choose_kv_chunk(T):
    """KV tile size. Small T: dense single pass. Large T: lane-aligned chunks."""
    if T <= 1024:
        return T
    for tk in (512, 256, 128):
        if T % tk == 0:
            return tk
    return T


def _choose_batch_block(B, T, C, Hp, tk, *, x_bytes, out_bytes,
                        target_rows, vmem_budget):
    """Pick how many batch elements to block per grid step."""
    divisors = [d for d in range(1, B + 1) if B % d == 0]
    # sublane dim of the x block must be a multiple of 8 (or span the full array)
    valid = [d for d in divisors if (d * T) % 8 == 0 or d * T == B * T] or [B]
    # Keep the parallel grid axis >= 2: v7x has 2 TensorCores and BlockSpec
    # pipelining needs >1 step to overlap DMA with compute.
    if B >= 2:
        capped = [d for d in valid if d <= B // 2]
        if capped:
            valid = capped

    def per_step_bytes(d):
        rows = d * T
        b = 2 * rows * C * x_bytes          # double-buffered x block
        b += 2 * rows * Hp * out_bytes      # double-buffered out block
        b += rows * 3 * Hp * 2              # bf16 qkv scratch
        b += rows * Hp * 4 + rows * 2 * 4   # f32 acc + m/l
        b += rows * Hp * 2                  # q view (bf16)
        b += 2 * d * tk * Hp * 2            # k/v chunks (bf16)
        b += rows * tk * (4 + 2)            # f32 scores + bf16 p
        return b

    fixed = 2 * C * 3 * Hp * 2 + 2 * T * tk * 4   # weight + mask (double-buffered)
    fitting = [d for d in valid
               if d * T <= target_rows and fixed + per_step_bytes(d) <= vmem_budget]
    return max(fitting) if fitting else min(valid)


def head_forward(x, wk, wq, wv, *, mxu_dtype=jnp.bfloat16, out_dtype=None):
    B, T, C = x.shape
    H = wk.shape[1]
    Hp = ((H + 127) // 128) * 128          # pad each slab to a lane multiple
    pad = Hp - H
    if out_dtype is None:
        out_dtype = mxu_dtype              # bf16 writeback (halves output HBM traffic)

    scale = jnp.float32(C) ** -0.5         # matches C ** (-0.5) in the module

    # Fused, per-slab zero-padded bf16 weight: (C, 3*Hp), order [q | k | v].
    # The 1/sqrt(C) scale is folded into the wq columns (one-time op).
    w_qkv = jnp.concatenate(
        [jnp.pad(wq * scale, ((0, 0), (0, pad))),
         jnp.pad(wk, ((0, 0), (0, pad))),
         jnp.pad(wv, ((0, 0), (0, pad)))], axis=1).astype(mxu_dtype)

    # bf16 activations at the pallas_call boundary: halves the dominant x DMA.
    x2 = x.reshape(B * T, C).astype(mxu_dtype)

    # Additive causal bias, built once: 0 on/below the diagonal, -inf above.
    row = jax.lax.broadcasted_iota(jnp.int32, (T, T), 0)
    col = jax.lax.broadcasted_iota(jnp.int32, (T, T), 1)
    mask = jnp.where(col <= row, 0.0, -jnp.inf).astype(jnp.float32)

    tk = _choose_kv_chunk(T)
    n_kv = T // tk

    vmem_cap = _vmem_capacity_bytes()
    vmem_budget = int(vmem_cap * 0.375)     # working-set budget for the chooser
    vmem_limit = int(vmem_cap * 0.72)       # scoped VMEM limit for the compiler
    target_rows = 1024 if vmem_cap >= (96 << 20) else 512   # v5e/v6e vs v7x

    bb = _choose_batch_block(
        B, T, C, Hp, tk,
        x_bytes=jnp.dtype(mxu_dtype).itemsize,
        out_bytes=jnp.dtype(out_dtype).itemsize,
        target_rows=target_rows, vmem_budget=vmem_budget)

    kernel = functools.partial(head_kernel, bb=bb, t=T, tk=tk, hp=Hp,
                               mxu_dtype=mxu_dtype)

    flops = 2 * B * T * C * 3 * Hp + 4 * B * T * T * Hp
    bytes_accessed = (B * T * C * jnp.dtype(mxu_dtype).itemsize
                      + (B // bb) * C * 3 * Hp * jnp.dtype(mxu_dtype).itemsize
                      + (B // bb) * T * T * 4
                      + B * T * Hp * jnp.dtype(out_dtype).itemsize)

    out = pl.pallas_call(
        kernel,
        out_shape=jax.ShapeDtypeStruct((B, T, Hp), out_dtype),
        grid_spec=pltpu.PrefetchScalarGridSpec(
            num_scalar_prefetch=0,
            grid=(B // bb, n_kv),
            in_specs=[
                pl.BlockSpec((bb * T, C), lambda i, j: (i, 0)),
                pl.BlockSpec((C, 3 * Hp), lambda i, j: (0, 0)),
                pl.BlockSpec((T, tk), lambda i, j: (0, j)),
            ],
            out_specs=pl.BlockSpec((bb, T, Hp), lambda i, j: (i, 0, 0)),
            scratch_shapes=[
                pltpu.VMEM((bb, T, 3 * Hp), mxu_dtype),   # fused qkv (bf16)
                pltpu.VMEM((bb, T, 1), jnp.float32),      # m (running max)
                pltpu.VMEM((bb, T, 1), jnp.float32),      # l (running sum)
                pltpu.VMEM((bb, T, Hp), jnp.float32),     # acc (unnormalized out)
            ]),
        compiler_params=pltpu.CompilerParams(
            dimension_semantics=("parallel", "arbitrary"),
            vmem_limit_bytes=vmem_limit,
        ),
        cost_estimate=pl.CostEstimate(
            flops=flops,
            transcendentals=B * T * T,
            bytes_accessed=bytes_accessed),
    )(x2, w_qkv, mask)

    # Drop the zero-padded head columns and restore (B, T, H).
    return out[:, :, :H]


def head_reference(x, wk, wq, wv):
    # plain-JAX reference mirroring the PyTorch forward (f32 throughout)
    B, T, C = x.shape
    k = x @ wk
    q = x @ wq
    v = x @ wv
    wei = (q @ jnp.swapaxes(k, -2, -1)) * (C ** -0.5)
    tril = jnp.tril(jnp.ones((T, T)))
    wei = jnp.where(tril == 0, -jnp.inf, wei)
    wei = jax.nn.softmax(wei, axis=-1)
    return wei @ v


if __name__ == "__main__":
    # small shapes: batch=2, seq (block_size)=8, n_embed=32, head_size=16
    B, T, C, H = 2, 8, 32, 16
    key = jax.random.PRNGKey(0)
    kx, kk, kq, kv = jax.random.split(key, 4)

    x = jax.random.normal(kx, (B, T, C), dtype=jnp.float32)
    # deterministic "Linear" weight init (stored transposed so forward is x @ W)
    wk = jax.random.normal(kk, (C, H), dtype=jnp.float32) * (C ** -0.5)
    wq = jax.random.normal(kq, (C, H), dtype=jnp.float32) * (C ** -0.5)
    wv = jax.random.normal(kv, (C, H), dtype=jnp.float32) * (C ** -0.5)

    out = head_forward(x, wk, wq, wv)
    out = jax.block_until_ready(out)

    ref = head_reference(x, wk, wq, wv)
    assert out.shape == (B, T, H)
    # Tolerance accounts for bf16 MXU inputs / bf16 output (f32 reference).
    assert jnp.allclose(out.astype(jnp.float32), ref, atol=5e-2, rtol=5e-2), \
        "mismatch vs reference"

    print("KERNEL_OK")
</pallas_src>

<mosaic_0001>
module attributes {stable_mosaic.version = 11 : i64} {
  func.func @head_kernel(%arg0: i32, %arg1: i32, %arg2: memref<8x32xbf16, #tpu.memory_space<vmem>>, %arg3: memref<32x384xbf16, #tpu.memory_space<vmem>>, %arg4: memref<8x8xf32, #tpu.memory_space<vmem>>, %arg5: memref<1x8x128xbf16, #tpu.memory_space<vmem>>, %arg6: memref<1x8x384xbf16, #tpu.memory_space<vmem>>, %arg7: memref<1x8x1xf32, #tpu.memory_space<vmem>>, %arg8: memref<1x8x1xf32, #tpu.memory_space<vmem>>, %arg9: memref<1x8x128xf32, #tpu.memory_space<vmem>>) attributes {dimension_semantics = [#tpu.dimension_semantics<parallel>, #tpu.dimension_semantics<arbitrary>], iteration_bounds = array<i64: 2, 1>, scalar_prefetch = 0 : i64, scratch_operands = 4 : i64, tpu.core_type = #tpu.core_type<tc>, window_params = [{transform_indices = @transform_0, window_bounds = array<i64: 8, 32>}, {pipeline_mode = #tpu.pipeline_mode<synchronous>, transform_indices = @transform_1, window_bounds = array<i64: 32, 384>}, {transform_indices = @transform_2, window_bounds = array<i64: 8, 8>}, {transform_indices = @transform_3, window_bounds = array<i64: 1, 8, 128>}]} {
    %c0_i32 = arith.constant 0 : i32
    %0 = arith.cmpi eq, %arg1, %c0_i32 : i32
    %1 = arith.extui %0 : i1 to i32
    %c0_i32_0 = arith.constant 0 : i32
    %2 = arith.cmpi ne, %1, %c0_i32_0 : i32
    scf.if %2 {
      %c0_30 = arith.constant 0 : index
      %c0_31 = arith.constant 0 : index
      %40 = vector.load %arg2[%c0_30, %c0_31] : memref<8x32xbf16, #tpu.memory_space<vmem>>, vector<8x32xbf16>
      %c0_32 = arith.constant 0 : index
      %c0_33 = arith.constant 0 : index
      %41 = vector.load %arg3[%c0_32, %c0_33] : memref<32x384xbf16, #tpu.memory_space<vmem>>, vector<32x384xbf16>
      %cst_34 = arith.constant dense<0.000000e+00> : vector<8x384xf32>
      %42 = tpu.matmul %40, %41, %cst_34 {dimension_numbers = #tpu.dot_dimension_numbers<[1], [0], [0], [1], [0, 0, 1, 1], [], []>} : vector<8x32xbf16>, vector<32x384xbf16>, vector<8x384xf32> -> vector<8x384xf32>
      %43 = vector.shape_cast %42 : vector<8x384xf32> to vector<1x8x384xf32>
      %44 = arith.truncf %43 : vector<1x8x384xf32> to vector<1x8x384xbf16>
      %c0_35 = arith.constant 0 : index
      %c0_36 = arith.constant 0 : index
      %c0_37 = arith.constant 0 : index
      %45 = vector.load %arg6[%c0_35, %c0_36, %c0_37] : memref<1x8x384xbf16, #tpu.memory_space<vmem>>, vector<1x8x384xbf16>
      tpu.vector_store %arg6[%c0_35, %c0_36, %c0_37], %44 {strides = array<i32>} : memref<1x8x384xbf16, #tpu.memory_space<vmem>>, vector<1x8x384xbf16>,
      %cst_38 = arith.constant 0xFF800000 : f32
      %46 = vector.broadcast %cst_38 : f32 to vector<1x8x1xf32>
      %c0_39 = arith.constant 0 : index
      %c0_40 = arith.constant 0 : index
      %c0_41 = arith.constant 0 : index
      %47 = vector.load %arg7[%c0_39, %c0_40, %c0_41] : memref<1x8x1xf32, #tpu.memory_space<vmem>>, vector<1x8x1xf32>
      tpu.vector_store %arg7[%c0_39, %c0_40, %c0_41], %46 {strides = array<i32>} : memref<1x8x1xf32, #tpu.memory_space<vmem>>, vector<1x8x1xf32>,
      %cst_42 = arith.constant 0.000000e+00 : f32
      %48 = vector.broadcast %cst_42 : f32 to vector<1x8x1xf32>
      %c0_43 = arith.constant 0 : index
      %c0_44 = arith.constant 0 : index
      %c0_45 = arith.constant 0 : index
      %49 = vector.load %arg8[%c0_43, %c0_44, %c0_45] : memref<1x8x1xf32, #tpu.memory_space<vmem>>, vector<1x8x1xf32>
      tpu.vector_store %arg8[%c0_43, %c0_44, %c0_45], %48 {strides = array<i32>} : memref<1x8x1xf32, #tpu.memory_space<vmem>>, vector<1x8x1xf32>,
      %cst_46 = arith.constant 0.000000e+00 : f32
      %50 = vector.broadcast %cst_46 : f32 to vector<1x8x128xf32>
      %c0_47 = arith.constant 0 : index
      %c0_48 = arith.constant 0 : index
      %c0_49 = arith.constant 0 : index
      %51 = vector.load %arg9[%c0_47, %c0_48, %c0_49] : memref<1x8x128xf32, #tpu.memory_space<vmem>>, vector<1x8x128xf32>
      tpu.vector_store %arg9[%c0_47, %c0_48, %c0_49], %50 {strides = array<i32>} : memref<1x8x128xf32, #tpu.memory_space<vmem>>, vector<1x8x128xf32>,
    } else {
    }
    %c0 = arith.constant 0 : index
    %c0_1 = arith.constant 0 : index
    %c0_2 = arith.constant 0 : index
    %3 = vector.load %arg6[%c0, %c0_1, %c0_2] : memref<1x8x384xbf16, #tpu.memory_space<vmem>>, vector<1x8x128xbf16>
    %c8_i32 = arith.constant 8 : i32
    %4 = arith.muli %arg1, %c8_i32 : i32
    %5 = tpu.assume_multiple %4, 8 : i32
    %c0_3 = arith.constant 0 : index
    %6 = arith.index_cast %5 : i32 to index
    %c0_4 = arith.constant 0 : index
    %7 = vector.load %arg6[%c0_3, %6, %c0_4] : memref<1x8x384xbf16, #tpu.memory_space<vmem>>, vector<1x8x384xbf16>
    %8 = vector.extract_strided_slice %7 {offsets = [0, 0, 128], sizes = [1, 8, 128], strides = [1, 1, 1]} : vector<1x8x384xbf16> to vector<1x8x128xbf16>
    %9 = vector.extract_strided_slice %7 {offsets = [0, 0, 256], sizes = [1, 8, 128], strides = [1, 1, 1]} : vector<1x8x384xbf16> to vector<1x8x128xbf16>
    "tpu.trace_start"() <{level = 10 : i32, message = "bqh,bkh->bqk"}> : () -> ()
    %cst = arith.constant dense<0.000000e+00> : vector<1x8x8xf32>
    %10 = tpu.matmul %3, %8, %cst {dimension_numbers = #tpu.dot_dimension_numbers<[2], [2], [1], [1], [0, 0, 0, 1, 1, 1], [0], [0]>} : vector<1x8x128xbf16>, vector<1x8x128xbf16>, vector<1x8x8xf32> -> vector<1x8x8xf32>
    "tpu.trace_stop"() : () -> ()
    %c0_5 = arith.constant 0 : index
    %c0_6 = arith.constant 0 : index
    %11 = vector.load %arg4[%c0_5, %c0_6] : memref<8x8xf32, #tpu.memory_space<vmem>>, vector<8x8xf32>
    %12 = vector.shape_cast %11 : vector<8x8xf32> to vector<1x8x8xf32>
    %13 = arith.addf %10, %12 : vector<1x8x8xf32>
    %c0_7 = arith.constant 0 : index
    %c0_8 = arith.constant 0 : index
    %c0_9 = arith.constant 0 : index
    %14 = vector.load %arg7[%c0_7, %c0_8, %c0_9] : memref<1x8x1xf32, #tpu.memory_space<vmem>>, vector<1x8x1xf32>
    %cst_10 = arith.constant dense<0xFF800000> : vector<1x8xf32>
    %15 = vector.multi_reduction <maximumf>, %13, %cst_10 [2] : vector<1x8x8xf32> to vector<1x8xf32>
    %16 = vector.shape_cast %15 : vector<1x8xf32> to vector<1x8x1xf32>
    %17 = arith.maximumf %14, %16 : vector<1x8x1xf32>
    %18 = arith.subf %14, %17 : vector<1x8x1xf32>
    %19 = math.exp %18 : vector<1x8x1xf32>
    %20 = vector.broadcast %17 : vector<1x8x1xf32> to vector<1x8x8xf32>
    %21 = arith.subf %13, %20 : vector<1x8x8xf32>
    %22 = math.exp %21 : vector<1x8x8xf32>
    %c0_11 = arith.constant 0 : index
    %c0_12 = arith.constant 0 : index
    %c0_13 = arith.constant 0 : index
    %23 = vector.load %arg8[%c0_11, %c0_12, %c0_13] : memref<1x8x1xf32, #tpu.memory_space<vmem>>, vector<1x8x1xf32>
    %24 = arith.mulf %19, %23 : vector<1x8x1xf32>
    %cst_14 = arith.constant dense<0.000000e+00> : vector<1x8xf32>
    %25 = vector.multi_reduction <add>, %22, %cst_14 [2] : vector<1x8x8xf32> to vector<1x8xf32>
    %26 = vector.shape_cast %25 : vector<1x8xf32> to vector<1x8x1xf32>
    %27 = arith.addf %24, %26 : vector<1x8x1xf32>
    %c0_15 = arith.constant 0 : index
    %c0_16 = arith.constant 0 : index
    %c0_17 = arith.constant 0 : index
    %28 = vector.load %arg8[%c0_15, %c0_16, %c0_17] : memref<1x8x1xf32, #tpu.memory_space<vmem>>, vector<1x8x1xf32>
    tpu.vector_store %arg8[%c0_15, %c0_16, %c0_17], %27 {strides = array<i32>} : memref<1x8x1xf32, #tpu.memory_space<vmem>>, vector<1x8x1xf32>,
    %c0_18 = arith.constant 0 : index
    %c0_19 = arith.constant 0 : index
    %c0_20 = arith.constant 0 : index
    %29 = vector.load %arg9[%c0_18, %c0_19, %c0_20] : memref<1x8x128xf32, #tpu.memory_space<vmem>>, vector<1x8x128xf32>
    %30 = vector.broadcast %19 : vector<1x8x1xf32> to vector<1x8x128xf32>
    %31 = arith.mulf %30, %29 : vector<1x8x128xf32>
    %32 = arith.truncf %22 : vector<1x8x8xf32> to vector<1x8x8xbf16>
    "tpu.trace_start"() <{level = 10 : i32, message = "bqk,bkh->bqh"}> : () -> ()
    %cst_21 = arith.constant dense<0.000000e+00> : vector<1x8x128xf32>
    %33 = tpu.matmul %32, %9, %cst_21 {dimension_numbers = #tpu.dot_dimension_numbers<[2], [1], [1], [2], [0, 0, 0, 1, 1, 2], [0], [0]>} : vector<1x8x8xbf16>, vector<1x8x128xbf16>, vector<1x8x128xf32> -> vector<1x8x128xf32>
    "tpu.trace_stop"() : () -> ()
    %34 = arith.addf %31, %33 : vector<1x8x128xf32>
    %c0_22 = arith.constant 0 : index
    %c0_23 = arith.constant 0 : index
    %c0_24 = arith.constant 0 : index
    %35 = vector.load %arg9[%c0_22, %c0_23, %c0_24] : memref<1x8x128xf32, #tpu.memory_space<vmem>>, vector<1x8x128xf32>
    tpu.vector_store %arg9[%c0_22, %c0_23, %c0_24], %34 {strides = array<i32>} : memref<1x8x128xf32, #tpu.memory_space<vmem>>, vector<1x8x128xf32>,
    %c0_25 = arith.constant 0 : index
    %c0_26 = arith.constant 0 : index
    %c0_27 = arith.constant 0 : index
    %36 = vector.load %arg7[%c0_25, %c0_26, %c0_27] : memref<1x8x1xf32, #tpu.memory_space<vmem>>, vector<1x8x1xf32>
    tpu.vector_store %arg7[%c0_25, %c0_26, %c0_27], %17 {strides = array<i32>} : memref<1x8x1xf32, #tpu.memory_space<vmem>>, vector<1x8x1xf32>,
    %c0_i32_28 = arith.constant 0 : i32
    %37 = arith.cmpi eq, %arg1, %c0_i32_28 : i32
    %38 = arith.extui %37 : i1 to i32
    %c0_i32_29 = arith.constant 0 : i32
    %39 = arith.cmpi ne, %38, %c0_i32_29 : i32
    scf.if %39 {
      %c0_30 = arith.constant 0 : index
      %c0_31 = arith.constant 0 : index
      %c0_32 = arith.constant 0 : index
      %40 = vector.load %arg8[%c0_30, %c0_31, %c0_32] : memref<1x8x1xf32, #tpu.memory_space<vmem>>, vector<1x8x1xf32>
      %41 = tpu.reciprocal %40 {approx = true} : vector<1x8x1xf32> -> vector<1x8x1xf32>
      %c0_33 = arith.constant 0 : index
      %c0_34 = arith.constant 0 : index
      %c0_35 = arith.constant 0 : index
      %42 = vector.load %arg9[%c0_33, %c0_34, %c0_35] : memref<1x8x128xf32, #tpu.memory_space<vmem>>, vector<1x8x128xf32>
      %43 = vector.broadcast %41 : vector<1x8x1xf32> to vector<1x8x128xf32>
      %44 = arith.mulf %42, %43 : vector<1x8x128xf32>
      %45 = arith.truncf %44 : vector<1x8x128xf32> to vector<1x8x128xbf16>
      %c0_36 = arith.constant 0 : index
      %c0_37 = arith.constant 0 : index
      %c0_38 = arith.constant 0 : index
      %46 = vector.load %arg5[%c0_36, %c0_37, %c0_38] : memref<1x8x128xbf16, #tpu.memory_space<vmem>>, vector<1x8x128xbf16>
      tpu.vector_store %arg5[%c0_36, %c0_37, %c0_38], %45 {strides = array<i32>} : memref<1x8x128xbf16, #tpu.memory_space<vmem>>, vector<1x8x128xbf16>,
    } else {
    }
    return
  }
  func.func @transform_0(%arg0: i32, %arg1: i32) -> (i32, i32) {
    %c0_i32 = arith.constant 0 : i32
    %c0_i32_0 = arith.constant 0 : i32
    return %arg0, %c0_i32 : i32, i32
  }
  func.func @transform_1(%arg0: i32, %arg1: i32) -> (i32, i32) {
    %c0_i32 = arith.constant 0 : i32
    %c0_i32_0 = arith.constant 0 : i32
    %c0_i32_1 = arith.constant 0 : i32
    return %c0_i32, %c0_i32_0 : i32, i32
  }
  func.func @transform_2(%arg0: i32, %arg1: i32) -> (i32, i32) {
    %c0_i32 = arith.constant 0 : i32
    %c0_i32_0 = arith.constant 0 : i32
    return %c0_i32, %arg1 : i32, i32
  }
  func.func @transform_3(%arg0: i32, %arg1: i32) -> (i32, i32, i32) {
    %c0_i32 = arith.constant 0 : i32
    %c0_i32_0 = arith.constant 0 : i32
    %c0_i32_1 = arith.constant 0 : i32
    return %arg0, %c0_i32, %c0_i32_0 : i32, i32, i32
  }
}

</mosaic_0001>

<bundles_post_ra>
// kernel: tpu_custom_call.1
= control target key start
LH: loop header
LB: loop body
LE: loop exit
PB: predicated region body
PF: predicated region fallthrough
CT: control target
= control target key end

     0   :  { %8 = vsyncpa [#allocation7], 0  ;;  %s1059_s0 = inlined_call_operand.hbm [shape: bf16[16,32], index: 0, kind: input, shape index: {}]   ;;  %s1060_s1 = inlined_call_operand.hbm [shape: bf16[32,384], index: 1, kind: input, shape index: {}]   ;;  %s1061_s2 = inlined_call_operand.hbm [shape: f32[8,8], index: 2, kind: input, shape index: {}]   ;;  %s1062_s3 = inlined_call_operand.hbm [shape: bf16[2,8,128], index: 3, kind: output, shape index: {}]  }
   0x1   :  { %10 = vsyncpa [#allocation7 + $0x1], 0 }
   0x2   :  { %11 = vsyncpa [#allocation10], 0 }
   0x3   :  { %12 = vsyncpa [#allocation8], 0 }
   0x4   :  { %14 = vsyncpa [#allocation8 + $0x1], 0  ;;  %s901_s12 = smov 0   ;;  %s903_s13 = smov 0  }
   0x5   :  { %s905_s14 = smov 0   ;;  %s907_s15 = smov 0  }
   0x6   :  { %s909_s16 = smov 0   ;;  %s911_s17 = smov 0  }
   0x7 LB: > { %s548_s18 = sadd.s32 4294967295, %s872_s17   ;;  %p550_p0 = scmp.ge.s32.totalorder %s872_s17, 1  ;;  %s872_s17 = sphi %s911_s17, %s20_s17   ;;  %s868_s16 = sphi %s909_s16, %s1072_s16   ;;  %s864_s15 = sphi %s907_s15, %s1071_s15   ;;  %s860_s14 = sphi %s905_s14, %s1070_s14   ;;  %s856_s13 = sphi %s903_s13, %s1069_s13   ;;  %s852_s12 = sphi %s901_s12, %s1068_s12  }
   0x8   : > { %p935_p1 = scmp.eq.s32.totalorder %s548_s18, 0  ;;  %p136_p2 = scmp.lt.s32.totalorder %s872_s17, 3 }
   0x9   : > { %s147_s22 = sshll.u32 %s1060_s1, 4  ;;  %s874_s24 = smov [#allocation9]   ;;  %s148_s22 = int_to_ptr.hbm [resolvable:$true] %s147_s22 }
   0xa   : > { %p943_p3 = pnand %p550_p0, %p136_p2  ;;  %s149_s25 = sshll.u32 %s874_s24, 4  ;;  %s150_s25 = int_to_ptr.vmem [resolvable:$true] %s149_s25 }
   0xb   : > { %p553_p6 = scmp.ge.s32.totalorder %s872_s17, 2  ;;  %s164_s28 = sshll.u32 %s1061_s2, 4  ;;  %s165_s28 = int_to_ptr.hbm [resolvable:$true] %s164_s28 }
   0xc   : > { %p611_p4 = pneg %p943_p3  ;;  %s875_s29 = smov 192  }
   0xd   : > { %s876_s30 = smov 12   ;;  %s877_s4 = smov [#allocation11]  }
   0xe   : > { %p612_p5 = pnand %p611_p4, %p935_p1  ;;  %s166_s5 = sshll.u32 %s877_s4, 4  ;;  %s167_s5 = int_to_ptr.vmem [resolvable:$true] %s166_s5 }
   0xf   : > { %s32_s6 = sadd.s32 1, %s868_s16  ;;  %s549_s7 = sadd.s32 4294967294, %s872_s17  }
  0x10   : > { %614 = dma.hbm_to_vmem [thread:$0]  (!%p612_p5), %s148_s22, 768, %s150_s25, [#allocation10], %s875_s29, %s875_s29, %s876_s30  }
  0x11   : > { %617 = dma.hbm_to_vmem [thread:$0]  (!%p612_p5), %s165_s28, 128, %s167_s5, [#allocation10]  }
  0x12   : > { %p34_p7 = scmp.ge.s32.totalorder %s32_s6, 2  ;;  %s39_s8 = sadd.s32 1, %s860_s14 }
  0x13   : > { %p46_p8 = scmp.ne.s32.totalorder %s860_s14, %s856_s13  ;;  %p47_p9 = scmp.eq.s32.totalorder %s872_s17, 0 }
  0x14   : > { %s1074_s6 = smov (%p34_p7, %s32_s6), 0  ;;  %p52_p10 = scmp.ne.s32.totalorder %s856_s13, %s852_s12 }
  0x15   : > { %s36_s9 = ssub.s32 %s868_s16, %s1074_s6  ;;  %p123_p11 = scmp.eq.s32.totalorder %s548_s18, 1 }
  0x16   : > { %p37_p12 = scmp.eq.s32.totalorder %s36_s9, 0  ;;  %p971_p13 = por %p935_p1, %p52_p10 }
  0x17   : > { %p975_p0 = por %p123_p11, %p46_p8  ;;  %p129_p2 = scmp.eq.s32.totalorder %s549_s7, 1 }
  0x18   : > { %s980_s20 = scalar_select %p37_p12, %s860_s14, %s39_s8  }
  0x19   : > { %p48_p4 = por %p47_p9, %p46_p8  ;;  %p982_p5 = por %p129_p2, %p52_p10 }
  0x1a   : > { %s177_s22 = sand.u32 1, %s860_s14   ;;  %s555_s18 = sshll.u32 %s868_s16, 2 }
  0x1b   : > { %p628_p7 = scmp.lt.s32.totalorder %s872_s17, 2  ;;  %s554_s24 = sshll.u32 %s177_s22, 2 }
  0x1c   : > { %s185_s27 = scalar_lea.hbm %s1059_s0, %s555_s18  ;;  %s181_s29 = scalar_lea.vmem [#allocation6], %s554_s24 }
  0x1d   : > { %s187_s28 = sshll.u32 %s185_s27, 4  ;;  %s189_s30 = sshll.u32 %s181_s29, 4  ;;  %s188_s28 = int_to_ptr.hbm [resolvable:$true] %s187_s28  ;;  %s190_s30 = int_to_ptr.vmem [resolvable:$true] %s189_s30 }
  0x1e   : > { %p619_p11 = pnand %p628_p7, %p48_p4  ;;  %s178_s4 = scalar_lea.sflag [#allocation7], %s177_s22 }
  0x1f   : > { %198 = sbr.rel (%p943_p3) target bundleno = 798 (0x31e), region = 32  ;;  %s995_s5 = sand.u32 (!%p943_p3), 1, %s856_s13  }
  0x20   : > { %621 = dma.hbm_to_vmem [thread:$0]  (!%p619_p11), %s188_s28, 64, %s190_s30, %s178_s4  }
  0x21   : > { %s557_s7 = sshll.u32 (!%p943_p3), %s995_s5, 2  ;;  %s201_s8 = scalar_lea.sflag (!%p943_p3), [#allocation7], %s995_s5 }
  0x22   : > { %s204_s9 = scalar_lea.vmem (!%p943_p3), [#allocation6], %s557_s7 }
  0x24   : > { %839 = dma.done.wait (%p971_p13), %s201_s8, 64  }
  0x25   : > { %841 = vsyncadd (%p971_p13), %s201_s8, 4294967232 }
  0x26   : > { %843 = dma.done.wait (%p935_p1), [#allocation10], 896  }
  0x27   : > { %845 = vsyncadd (%p935_p1), [#allocation10], 4294966400  ;;  %v575_v0 = vld [vmem:[#allocation9 + $0x18] sm:$0xf]  ;;  %v597_v1 = vld [vmem:[#allocation9 + $0x20] sm:$0xf0] }
  0x28   : > { %v596_v2 = vld [vmem:[#allocation9 + $0x1c] sm:$0xf]  ;;  %v576_v3 = vor.u32 %v597_v1, %v575_v0  ;;  %v577_v4 = vld [vmem:[#allocation9 + $0x24] sm:$0xf0]  ;;  %v563_v5 = vld [vmem:[#allocation9] sm:$0xf] }
  0x29   : > { %v594_v6 = vld [vmem:[#allocation9 + $0x8] sm:$0xf0]  ;;  %v580_v7 = vor.u32 %v596_v2, %v577_v4  ;;  %v593_v8 = vld [vmem:[#allocation9 + $0x4] sm:$0xf]  ;;  %v565_v9 = vld [vmem:[#allocation9 + $0xc] sm:$0xf0] }
  0x2a   : > { %294 = vmatpush.bf16.msra.mxu0 %v576_v3  ;;  %v564_v10 = vor.u32 %v594_v6, %v563_v5  ;;  %v568_v11 = vor.u32 %v593_v8, %v565_v9  ;;  %v243_v12 = vld [vmem:[%s204_s9] sm:$0xf]  ;;  %vm284_vm0 = vcmask 261120   ;;  %v583_v20 = vld [vmem:[#allocation9 + $0x20] sm:$0xf]  ;;  %vm331_vm1 = vcmask 7168  }
  0x2b   : > { %307 = vmatpush.bf16.msra.mxu1 %v580_v7  ;;  %v598_v21 = vld [vmem:[#allocation9 + $0x28] sm:$0xf0]  ;;  %v571_v22 = vld [vmem:[#allocation9 + $0x8] sm:$0xf]  ;;  %v595_v24 = vld [vmem:[#allocation9 + $0x10] sm:$0xf0] }
  0x2c   : > { %v584_v23 = vor.u32 %v598_v21, %v583_v20  ;;  %v878_v25 = vmov -inf   ;;  %v572_v26 = vor.u32 %v595_v24, %v571_v22  ;;  %v344_v27 = vld [vmem:[#allocation11] sm:$0xff]  ;;  %vm362_vm2 = vcmask 64512   ;;  %s590_s19 = sshll.u32 %s864_s15, 2  ;;  %s237_s18 = scalar_lea.vmem [#allocation12], %s557_s7 }
  0x2d   : > { %332 = vst.msk [vmem:[#allocation3] sm:$0xff] %vm331_vm1, %v878_v25  ;;  %v879_v32 = vmov 0   ;;  %v880_v33 = vmov 0.0   ;;  %vm397_vm3 = vcmask 1043456   ;;  %s442_s22 = scalar_lea.hbm %s1062_s3, %s590_s19  ;;  %s444_s24 = sshll.u32 %s237_s18, 4  ;;  %s445_s24 = int_to_ptr.vmem [resolvable:$true] %s444_s24 }
  0x2e   : > { %295 = vmatpush.bf16.msra.mxu0 %v564_v10  ;;  %320 = vmatpush.bf16.msra.mxu2 %v584_v23  ;;  %333 = vst.msk [vmem:[#allocation4] sm:$0xff] %vm331_vm1, %v880_v33  ;;  %s446_s25 = sshll.u32 %s442_s22, 4  ;;  %s432_s26 = scalar_lea.sflag [#allocation8], %s995_s5  ;;  %s447_s25 = int_to_ptr.hbm [resolvable:$true] %s446_s25 }
  0x2f   : > { %308 = vmatpush.bf16.msra.mxu1 %v568_v11  ;;  %687 = vset.pattern.permute.xlu0 %v879_v32  ;;  %s800_s27 = sshra.s32 %s447_s25, 4  ;;  %s806_s30 = scalar_lea.hbm %s1062_s3, 8  ;;  %s801_s27 = int_to_ptr.hbm [resolvable:$true] %s800_s27 }
  0x30   : > { %688 = vset.pattern.permute.xlu1 %v879_v32  ;;  %689 = vset.pattern.permute.xlu2 %v879_v32  ;;  %s802_s15 = scalar_lea.hbm %s801_s27, 4  ;;  %p807_p9 = scmp.lt.s32.totalorder %s801_s27, %s1062_s3 }
  0x31   : > { %585 = vmatmul.msk.bf16.vlgmr.msra.gmra.mxu0 %vm284_vm0, %v243_v12  ;;  %p803_p1 = scmp.ne.s32.totalorder %s801_s27, %s802_s15  ;;  %p808_p10 = scmp.lt.s32.totalorder %s806_s30, %s802_s15 }
  0x32   : > { %586 = vmatmul.msk.bf16.vlgmr.msra.gmra.mxu1 %vm284_vm0, %v243_v12  ;;  %321 = vmatpush.bf16.msra.mxu2 %v572_v26 }
  0x33   : > { %p804_p3 = pnand %p803_p1, %p975_p0  ;;  %p809_p12 = por %p808_p10, %p807_p9 }
  0x34   : > { %v361_v34 = vld [vmem:[#allocation3] sm:$0xff] }
  0x35   : > { %587 = vmatmul.msk.bf16.vlgmr.msra.gmra.mxu2 %vm284_vm0, %v243_v12  ;;  %v378_v51 = vld [vmem:[#allocation4] sm:$0xff]  ;;  %p805_p8 = pneg %p804_p3 }
  0x37   : > { %p810_p13 = pnand %p809_p12, %p805_p8 }
  0xae   : > { %v297_v13 = vpop.f32.mrf.mxu0 }
  0xaf   : > { %v310_v14 = vpop.f32.mrf.mxu1 }
  0xb0   : > { %v327_v15 = vpack.c.bf16 %v310_v14, %v297_v13 }
  0xb2   : > { %329 = vst [vmem:[#allocation2] sm:$0xff] %v327_v15  ;;  %v346_v16 = vrot.slane %v327_v15, 4 }
  0xb4   : > { %355 = vmatpush.bf16.xpose.msra.mxu3 %v346_v16 }
  0xb6   : > { %v299_v17 = vpop.f32.mrf.mxu0 }
  0xb7   : > { %v312_v18 = vpop.f32.mrf.mxu1 }
  0xb8   : > { %v323_v35 = vpop.f32.mrf.mxu2 }
  0xb9   : > { %v335_v19 = vld [vmem:[#allocation2] sm:$0xf]  ;;  %v328_v36 = vpack.c.bf16 %v323_v35, %v323_v35 }
  0xbb   : > { %356 = vmatmul.bf16.vlgmr.msra.gmra.mxu3 %v335_v19  ;;  %330 = vst [vmem:[#allocation2 + $0x8] sm:$0xf] %v328_v36 }
  0xc0   : > { %v325_v40 = vpop.f32.mrf.mxu2 }
  0xc2   : > { %v343_v41 = vld [vmem:[#allocation2 + $0x8] sm:$0xf] }
  0xc3   : > { %v399_v42 = vsel %vm397_vm3, %v343_v41, 0 }
  0xc4   : > { %408 = vmatpush.bf16.msrb.mxu0 %v399_v42 }
 0x13e   : > { %v357_v28 = vpop.f32.mrf.mxu3 }
 0x13f   : > { %v358_v29 = vadd.f32 %v357_v28, %v344_v27 }
 0x141   : > { %v363_v30 = vsel %vm362_vm2, %v358_v29, -inf }
 0x142   : > { %364 = vmax.xlane.f32.xlu0 %v363_v30 }
 0x146   : > { %v359_v31 = vpop.f32.mrf.mxu3 }
 0x1b5   : > { %v365_v37 = vpop.xlane.xlu0 %364 }
 0x1b6   : > { %v366_v38 = vmax.f32 %v361_v34, %v365_v37 }
 0x1b8   : > { %v367_v39 = vsub.f32 %v361_v34, %v366_v38  ;;  %416 = vst.msk [vmem:[#allocation3] sm:$0xff] %vm331_vm1, %v366_v38  ;;  %372 = vperm.xlu0 %687, %v366_v38  }
 0x1ba   : > { %v368_v49 = vmul.f32 1.442695, %v367_v39 }
 0x22a   : > { %v373_v43 = vpop.permute.xlu0 %372 }
 0x22b   : > { %v375_v44 = vsub.f32 %v358_v29, %v373_v43 }
 0x22d   : > { %v376_v45 = vmul.f32 1.442695, %v375_v44 }
 0x22f   : > { %690 = vpow2.f32 %v376_v45 }
 0x230   : > { %692 = vpow2.f32 %v368_v49 }
 0x235   : > { %v691_v46 = vpop.eup %690 }
 0x236   : > { %v380_v47 = vsel %vm362_vm2, %v691_v46, 0.0  ;;  %v393_v48 = vpack.c.bf16 %v691_v46, %v691_v46  ;;  %v693_v50 = vpop.eup %692 }
 0x237   : > { %381 = vadd.xlane.f32.xlu1 %v380_v47  ;;  %v379_v52 = vmul.f32 %v693_v50, %v378_v51 }
 0x238   : > { %588 = vmatmul.msk.bf16.vlgmr.msrb.gmra.mxu0 %vm362_vm2, %v393_v48 }
 0x250   : > { %389 = vperm.xlu1 %688, %v693_v50  }
 0x2aa   : > { %v382_v53 = vpop.xlane.xlu1 %381 }
 0x2ab   : > { %v383_v54 = vadd.f32 %v382_v53, %v379_v52 }
 0x2ad   : > { %385 = vst.msk [vmem:[#allocation4] sm:$0xff] %vm331_vm1, %v383_v54 }
 0x2b4   : > { %v420_v55 = vld [vmem:[#allocation4] sm:$0xff] }
 0x2b5   : > { %v410_v56 = vpop.f32.mrf.mxu0  ;;  %694 = vrcp.f32 %v420_v55 }
 0x2bb   : > { %v695_v57 = vpop.eup %694 }
 0x2bc   : > { %425 = vperm.xlu2 %689, %v695_v57  }
 0x2bd   : > { %v412_v58 = vpop.f32.mrf.mxu0 }
 0x2c2   : > { %v390_v59 = vpop.permute.xlu1 %389 }
 0x2c3   : > { %v392_v60 = vmul.f32 0.0, %v390_v59 }
 0x2c5   : > { %v414_v61 = vadd.f32 %v410_v56, %v392_v60 }
 0x316   : > { %v426_v62 = vpop.permute.xlu2 %425 }
 0x317   : > { %v428_v63 = vmul.f32 %v426_v62, %v414_v61 }
 0x319   : > { %v429_v0 = vpack.c.bf16 %v428_v63, %v428_v63 }
 0x31b   : > { %430 = vst [vmem:[%s237_s18] sm:$0xf] %v429_v0 }
 0x31c   : > { %813 = shalt.err (!%p810_p13)
}
 0x31d   : > { %609 = dma.vmem_to_hbm [thread:$0]  (%p975_p0), %s445_s24, 64, %s447_s25, %s432_s26  }
 0x31e PF: > { %s458_s5 = sand.u32 1, %s852_s12   ;;  %p623_p2 = pnand %p553_p6, %p982_p5 }
 0x31f   : > { %s459_s8 = scalar_lea.sflag [#allocation8], %s458_s5 }
 0x320   : > { %p624_p4 = pneg %p623_p2 }
 0x322   : > { %847 = dma.done.wait (%p624_p4), %s459_s8, 64  }
 0x323   : > { %849 = vsyncadd (%p624_p4), %s459_s8, 4294967232  ;;  %s20_s17 = sadd.s32 1, %s872_s17   ;;  %s1068_s12 = smov %s856_s13 }
 0x324   : > { %p17_p7 = scmp.ge.s32.totalorder %s20_s17, 4   ;;  %s1069_s13 = smov %s860_s14 }
 0x325   : > { %s1070_s14 = smov %s980_s20  ;;  %s1071_s15 = smov %s868_s16 }
 0x326   : > { %s1072_s16 = smov %s1074_s6  ;;  %19 = sbr.rel (!%p17_p7) target bundleno = 7 (0x7), region = 95 }
 0x32b   :  { %465 = vsyncpa [#allocation7], 1 }
 0x32c   :  { %467 = vsyncpa [#allocation7 + $0x1], 1 }
 0x32d   :  { %468 = vsyncpa [#allocation10], 1 }
 0x32e   :  { %469 = vsyncpa [#allocation8], 1 }
 0x32f   :  { %471 = vsyncpa [#allocation8 + $0x1], 1 }

</bundles_post_ra>
